<compile_context>
chip_gen: v7x
topology: tpu7x:2x2x1
jax: 0.10.0
libtpu: 0.0.40
codegen_flags: <defaults>
</compile_context>

<pallas_src>
import functools
import math

import jax
import jax.numpy as jnp
from jax import lax
from jax.experimental import pallas as pl
from jax.experimental.pallas import tpu as pltpu


def _conv_bn_relu_kernel(x_ref, w_ref, shift_ref, o_ref, *,
                         TH, TH_in, Wo, KH, KW, Cin, Cout8, stride, dilation):
    """One (batch, output-row-tile) grid step.

    x_ref:     (1, Hp, Wp, Cin)       bf16 NHWC, spatially pre-padded, whole image
                                      (VMEM-resident across the row-tile axis)
    w_ref:     (KH*KW*Cin, Cpad)      bf16, BN scale already folded in
    shift_ref: (1, Cpad)              f32 folded BN shift
    o_ref:     (1, Cout8, TH*Wo)      f32 channel-major (NCHW-flat) output tile
    """
    h = pl.program_id(1)
    # First padded-input row needed by this output-row tile.
    row0 = pl.multiple_of(h * (TH * stride), TH * stride)
    x = x_ref[0, pl.ds(row0, TH_in), :, :]            # (TH_in, Wp, Cin) bf16

    span_h = (TH - 1) * stride + 1
    span_w = (Wo - 1) * stride + 1

    # im2col: concatenate the KH*KW shifted (strided/dilated) patches along the
    # channel axis and contract against the flattened weight slab in a single
    # MXU matmul (one push instead of KH*KW tiny-K pushes).
    taps = []
    for kh in range(KH):
        for kw in range(KW):
            r0 = kh * dilation
            c0 = kw * dilation
            taps.append(x[r0:r0 + span_h:stride, c0:c0 + span_w:stride, :])
    im2col = jnp.concatenate(taps, axis=-1)            # (TH, Wo, KH*KW*Cin)
    im2col = im2col.reshape(TH * Wo, KH * KW * Cin)    # lane dim unchanged

    acc = jnp.dot(im2col, w_ref[...],
                  preferred_element_type=jnp.float32)  # (TH*Wo, Cpad) f32

    # Folded BatchNorm shift (scale already in the weights) + ReLU.
    y = jnp.maximum(acc + shift_ref[...], 0.0)

    # Transpose to channel-major so the stored tile is (Cout8, TH*Wo):
    # lane-dense stores, no 128-channel padding written back to HBM, and the
    # wrapper can return NCHW with a plain reshape (no XLA transpose pass).
    o_ref[0] = y.T[:Cout8, :].astype(o_ref.dtype)


def basic_conv2d(x_nchw, weight, gamma, beta, running_mean, running_var,
                 *, stride=1, padding=0, dilation=1, eps=1e-5, row_tile=8):
    """Forward pass of BasicConv2d (eval-mode BN). NCHW in / NCHW out."""
    N, Cin, H, W = x_nchw.shape
    Cout, Cin_w, KH, KW = weight.shape
    assert Cin == Cin_w

    # PyTorch conv output size.
    Ho = (H + 2 * padding - dilation * (KH - 1) - 1) // stride + 1
    Wo = (W + 2 * padding - dilation * (KW - 1) - 1) // stride + 1

    # Output row tile: TH*Wo must be a multiple of 128 (lane dim of the
    # channel-major output block), unless the whole image is one tile (HT==1),
    # in which case the block equals the full dims and the constraint is waived.
    lane_req = 128 // math.gcd(Wo, 128)
    if Ho >= lane_req:
        TH = max(lane_req, (min(row_tile, Ho) // lane_req) * lane_req)
    else:
        TH = Ho
    HT = pl.cdiv(Ho, TH)
    Ho_pad = HT * TH
    TH_in = (TH - 1) * stride + dilation * (KH - 1) + 1

    # Pad input spatially so every tile's input window (including the last,
    # possibly overhanging tile) stays in-bounds; extra rows are zeros and the
    # corresponding extra output rows are sliced away below.
    Hp = max(H + 2 * padding, (Ho_pad - 1) * stride + dilation * (KH - 1) + 1)
    Wp = max(W + 2 * padding, (Wo - 1) * stride + dilation * (KW - 1) + 1)

    # NCHW -> NHWC, cast to bf16 (MXU-native, halves input DMA), zero-pad in bf16.
    x = jnp.transpose(x_nchw, (0, 2, 3, 1)).astype(jnp.bfloat16)
    x = jnp.pad(x, ((0, 0),
                    (padding, Hp - H - padding),
                    (padding, Wp - W - padding),
                    (0, 0)))

    # Fold BN (eval mode) into the weights (scale) and a per-channel shift.
    scale = gamma.astype(jnp.float32) / jnp.sqrt(
        running_var.astype(jnp.float32) + eps)
    shift = beta.astype(jnp.float32) - running_mean.astype(jnp.float32) * scale

    Cpad = ((Cout + 127) // 128) * 128   # matmul lane width
    Cout8 = ((Cout + 7) // 8) * 8        # stored (sublane) channel width
    K2C = KH * KW * Cin
    w = weight.astype(jnp.float32) * scale[:, None, None, None]     # (Cout,Cin,KH,KW)
    w = jnp.transpose(w, (2, 3, 1, 0)).reshape(K2C, Cout)           # (kh,kw,cin) x Cout
    w = jnp.pad(w, ((0, 0), (0, Cpad - Cout))).astype(jnp.bfloat16)
    shift = jnp.pad(shift, (0, Cpad - Cout)).reshape(1, Cpad)

    kernel = functools.partial(
        _conv_bn_relu_kernel,
        TH=TH, TH_in=TH_in, Wo=Wo, KH=KH, KW=KW, Cin=Cin, Cout8=Cout8,
        stride=stride, dilation=dilation)

    out = pl.pallas_call(
        kernel,
        out_shape=jax.ShapeDtypeStruct((N, Cout8, Ho_pad * Wo), jnp.float32),
        grid=(N, HT),
        in_specs=[
            # Whole padded image per batch element; block index constant along
            # the row-tile axis, so it stays VMEM-resident and is only
            # re-DMA'd per n.
            pl.BlockSpec((1, Hp, Wp, Cin), lambda n, h: (n, 0, 0, 0)),
            pl.BlockSpec((K2C, Cpad), lambda n, h: (0, 0)),
            pl.BlockSpec((1, Cpad), lambda n, h: (0, 0)),
        ],
        out_specs=pl.BlockSpec((1, Cout8, TH * Wo), lambda n, h: (n, 0, h)),
        compiler_params=pltpu.CompilerParams(
            dimension_semantics=("parallel", "parallel")),
    )(x, w, shift)

    # (N, Cout8, Ho_pad*Wo) is already channel-major: just reshape and drop the
    # channel / row padding.
    out = out.reshape(N, Cout8, Ho_pad, Wo)[:, :Cout, :Ho, :]
    return out


def _reference(x_nchw, weight, gamma, beta, running_mean, running_var,
               *, stride=1, padding=0, dilation=1, eps=1e-5):
    """Pure-JAX f32 reference (conv + eval-mode BN + ReLU)."""
    y = lax.conv_general_dilated(
        x_nchw.astype(jnp.float32), weight.astype(jnp.float32),
        window_strides=(stride, stride),
        padding=[(padding, padding), (padding, padding)],
        rhs_dilation=(dilation, dilation),
        dimension_numbers=("NCHW", "OIHW", "NCHW"))
    scale = gamma / jnp.sqrt(running_var + eps)
    shift = beta - running_mean * scale
    y = y * scale[None, :, None, None] + shift[None, :, None, None]
    return jnp.maximum(y, 0.0)


if __name__ == "__main__":
    # Module config: BasicConv2d(in_channel=4, out_channel=8, kernel_size=3, padding=1)
    N, Cin, H, W = 2, 4, 16, 16
    Cout, K = 8, 3
    stride, padding, dilation = 1, 1, 1

    key = jax.random.PRNGKey(0)
    kx, kw, kg, kb, km, kv = jax.random.split(key, 6)

    x = jax.random.normal(kx, (N, Cin, H, W), dtype=jnp.float32)
    weight = jax.random.normal(kw, (Cout, Cin, K, K), dtype=jnp.float32) * 0.1
    gamma = 1.0 + 0.1 * jax.random.normal(kg, (Cout,), dtype=jnp.float32)
    beta = 0.1 * jax.random.normal(kb, (Cout,), dtype=jnp.float32)
    running_mean = 0.1 * jax.random.normal(km, (Cout,), dtype=jnp.float32)
    running_var = jnp.abs(1.0 + 0.1 * jax.random.normal(kv, (Cout,), dtype=jnp.float32))

    out = basic_conv2d(x, weight, gamma, beta, running_mean, running_var,
                       stride=stride, padding=padding, dilation=dilation)
    out = jax.block_until_ready(out)

    ref = _reference(x, weight, gamma, beta, running_mean, running_var,
                     stride=stride, padding=padding, dilation=dilation)
    assert out.shape == ref.shape, (out.shape, ref.shape)
    # bf16 operands (f32 accumulation) -> loosened tolerance vs. the f32 reference.
    assert jnp.allclose(out, ref, atol=2e-2, rtol=2e-2), "mismatch vs reference"

    print("KERNEL_OK")
</pallas_src>

<mosaic_0001>
module attributes {stable_mosaic.version = 11 : i64} {
  func.func @_conv_bn_relu_kernel(%arg0: i32, %arg1: i32, %arg2: memref<1x18x18x4xbf16, #tpu.memory_space<vmem>>, %arg3: memref<36x128xbf16, #tpu.memory_space<vmem>>, %arg4: memref<1x128xf32, #tpu.memory_space<vmem>>, %arg5: memref<1x8x128xf32, #tpu.memory_space<vmem>>) attributes {dimension_semantics = [#tpu.dimension_semantics<parallel>, #tpu.dimension_semantics<parallel>], iteration_bounds = array<i64: 2, 2>, scalar_prefetch = 0 : i64, scratch_operands = 0 : i64, tpu.core_type = #tpu.core_type<tc>, window_params = [{transform_indices = @transform_0, window_bounds = array<i64: 1, 18, 18, 4>}, {pipeline_mode = #tpu.pipeline_mode<synchronous>, transform_indices = @transform_1, window_bounds = array<i64: 36, 128>}, {pipeline_mode = #tpu.pipeline_mode<synchronous>, transform_indices = @transform_2, window_bounds = array<i64: 1, 128>}, {transform_indices = @transform_3, window_bounds = array<i64: 1, 8, 128>}]} {
    %c8_i32 = arith.constant 8 : i32
    %0 = arith.muli %arg1, %c8_i32 : i32
    %1 = tpu.assume_multiple %0, 8 : i32
    %c0 = arith.constant 0 : index
    %2 = arith.index_cast %1 : i32 to index
    %c0_0 = arith.constant 0 : index
    %c0_1 = arith.constant 0 : index
    %3 = vector.load %arg2[%c0, %2, %c0_0, %c0_1] : memref<1x18x18x4xbf16, #tpu.memory_space<vmem>>, vector<1x10x18x4xbf16>
    %4 = vector.shape_cast %3 : vector<1x10x18x4xbf16> to vector<10x18x4xbf16>
    %5 = vector.extract_strided_slice %4 {offsets = [0, 0, 0], sizes = [8, 16, 4], strides = [1, 1, 1]} : vector<10x18x4xbf16> to vector<8x16x4xbf16>
    %6 = vector.extract_strided_slice %4 {offsets = [0, 1, 0], sizes = [8, 16, 4], strides = [1, 1, 1]} : vector<10x18x4xbf16> to vector<8x16x4xbf16>
    %7 = vector.extract_strided_slice %4 {offsets = [0, 2, 0], sizes = [8, 16, 4], strides = [1, 1, 1]} : vector<10x18x4xbf16> to vector<8x16x4xbf16>
    %8 = vector.extract_strided_slice %4 {offsets = [1, 0, 0], sizes = [8, 16, 4], strides = [1, 1, 1]} : vector<10x18x4xbf16> to vector<8x16x4xbf16>
    %9 = vector.extract_strided_slice %4 {offsets = [1, 1, 0], sizes = [8, 16, 4], strides = [1, 1, 1]} : vector<10x18x4xbf16> to vector<8x16x4xbf16>
    %10 = vector.extract_strided_slice %4 {offsets = [1, 2, 0], sizes = [8, 16, 4], strides = [1, 1, 1]} : vector<10x18x4xbf16> to vector<8x16x4xbf16>
    %11 = vector.extract_strided_slice %4 {offsets = [2, 0, 0], sizes = [8, 16, 4], strides = [1, 1, 1]} : vector<10x18x4xbf16> to vector<8x16x4xbf16>
    %12 = vector.extract_strided_slice %4 {offsets = [2, 1, 0], sizes = [8, 16, 4], strides = [1, 1, 1]} : vector<10x18x4xbf16> to vector<8x16x4xbf16>
    %13 = vector.extract_strided_slice %4 {offsets = [2, 2, 0], sizes = [8, 16, 4], strides = [1, 1, 1]} : vector<10x18x4xbf16> to vector<8x16x4xbf16>
    %14 = tpu.concatenate %5, %6, %7, %8, %9, %10, %11, %12, %13 in 2 : vector<8x16x4xbf16>, vector<8x16x4xbf16>, vector<8x16x4xbf16>, vector<8x16x4xbf16>, vector<8x16x4xbf16>, vector<8x16x4xbf16>, vector<8x16x4xbf16>, vector<8x16x4xbf16>, vector<8x16x4xbf16> -> vector<8x16x36xbf16>
    %15 = vector.shape_cast %14 : vector<8x16x36xbf16> to vector<128x36xbf16>
    %c0_2 = arith.constant 0 : index
    %c0_3 = arith.constant 0 : index
    %16 = vector.load %arg3[%c0_2, %c0_3] : memref<36x128xbf16, #tpu.memory_space<vmem>>, vector<36x128xbf16>
    %cst = arith.constant dense<0.000000e+00> : vector<128x128xf32>
    %17 = tpu.matmul %15, %16, %cst {dimension_numbers = #tpu.dot_dimension_numbers<[1], [0], [0], [1], [0, 0, 1, 1], [], []>} : vector<128x36xbf16>, vector<36x128xbf16>, vector<128x128xf32> -> vector<128x128xf32>
    %c0_4 = arith.constant 0 : index
    %c0_5 = arith.constant 0 : index
    %18 = vector.load %arg4[%c0_4, %c0_5] : memref<1x128xf32, #tpu.memory_space<vmem>>, vector<1x128xf32>
    %19 = vector.broadcast %18 : vector<1x128xf32> to vector<128x128xf32>
    %20 = arith.addf %17, %19 : vector<128x128xf32>
    %cst_6 = arith.constant 0.000000e+00 : f32
    %21 = vector.broadcast %cst_6 : f32 to vector<128x128xf32>
    %22 = arith.maximumf %20, %21 : vector<128x128xf32>
    %23 = tpu.transpose %22, [1, 0] : vector<128x128xf32> -> vector<128x128xf32>
    %24 = vector.extract_strided_slice %23 {offsets = [0, 0], sizes = [8, 128], strides = [1, 1]} : vector<128x128xf32> to vector<8x128xf32>
    %c0_7 = arith.constant 0 : index
    %c0_8 = arith.constant 0 : index
    %c0_9 = arith.constant 0 : index
    %25 = vector.load %arg5[%c0_7, %c0_8, %c0_9] : memref<1x8x128xf32, #tpu.memory_space<vmem>>, vector<1x8x128xf32>
    %26 = vector.shape_cast %25 : vector<1x8x128xf32> to vector<8x128xf32>
    %27 = vector.shape_cast %24 : vector<8x128xf32> to vector<1x8x128xf32>
    tpu.vector_store %arg5[%c0_7, %c0_8, %c0_9], %27 {strides = array<i32>} : memref<1x8x128xf32, #tpu.memory_space<vmem>>, vector<1x8x128xf32>,
    return
  }
  func.func @transform_0(%arg0: i32, %arg1: i32) -> (i32, i32, i32, i32) {
    %c0_i32 = arith.constant 0 : i32
    %c0_i32_0 = arith.constant 0 : i32
    %c0_i32_1 = arith.constant 0 : i32
    %c0_i32_2 = arith.constant 0 : i32
    return %arg0, %c0_i32, %c0_i32_0, %c0_i32_1 : i32, i32, i32, i32
  }
  func.func @transform_1(%arg0: i32, %arg1: i32) -> (i32, i32) {
    %c0_i32 = arith.constant 0 : i32
    %c0_i32_0 = arith.constant 0 : i32
    %c0_i32_1 = arith.constant 0 : i32
    return %c0_i32, %c0_i32_0 : i32, i32
  }
  func.func @transform_2(%arg0: i32, %arg1: i32) -> (i32, i32) {
    %c0_i32 = arith.constant 0 : i32
    %c0_i32_0 = arith.constant 0 : i32
    %c0_i32_1 = arith.constant 0 : i32
    return %c0_i32, %c0_i32_0 : i32, i32
  }
  func.func @transform_3(%arg0: i32, %arg1: i32) -> (i32, i32, i32) {
    %c0_i32 = arith.constant 0 : i32
    %c0_i32_0 = arith.constant 0 : i32
    return %arg0, %c0_i32, %arg1 : i32, i32, i32
  }
}

</mosaic_0001>

<bundles_post_ra>
// kernel: tpu_custom_call.1
= control target key start
LH: loop header
LB: loop body
LE: loop exit
PB: predicated region body
PF: predicated region fallthrough
CT: control target
= control target key end

     0   :  { %8 = vsyncpa [#allocation3], 0  ;;  %s1772_s0 = inlined_call_operand.vmem [shape: bf16[2,18,18,4], index: 0, kind: input, shape index: {}]   ;;  %s1773_s1 = inlined_call_operand.vmem [shape: bf16[36,128], index: 1, kind: input, shape index: {}]   ;;  %s1774_s2 = inlined_call_operand.vmem [shape: f32[1,128], index: 2, kind: input, shape index: {}]   ;;  %s1775_s3 = inlined_call_operand.hbm [shape: f32[2,8,256], index: 3, kind: output, shape index: {}]  }
   0x1   :  { %10 = vsyncpa [#allocation3 + $0x1], 0  ;;  %s1315_s12 = smov 0   ;;  %s1317_s13 = smov 0  }
   0x2   :  { %s1319_s14 = smov 0   ;;  %s1321_s15 = smov 0  }
   0x3   :  { %s1323_s16 = smov 0   ;;  %s1325_s17 = smov 0  }
   0x4   :  { %s1327_s18 = smov 0   ;;  %s1329_s19 = smov 0  }
   0x5 LB: > { %s998_s20 = sadd.s32 4294967295, %s1284_s19   ;;  %s999_s21 = sadd.s32 4294967294, %s1284_s19   ;;  %s1284_s19 = sphi %s1329_s19, %s16_s19   ;;  %s1280_s18 = sphi %s1327_s18, %s1784_s18   ;;  %s1276_s17 = sphi %s1325_s17, %s1783_s17   ;;  %s1272_s16 = sphi %s1323_s16, %s1782_s16   ;;  %s1268_s15 = sphi %s1321_s15, %s1781_s15   ;;  %s1264_s14 = sphi %s1319_s14, %s1780_s14   ;;  %s1260_s13 = sphi %s1317_s13, %s1779_s13   ;;  %s1256_s12 = sphi %s1315_s12, %s1778_s12  }
   0x6   : > { %s25_s22 = sadd.s32 1, %s1276_s17  ;;  %s28_s23 = sadd.s32 1, %s1280_s18 }
   0x7   : > { %p26_p0 = scmp.ge.s32.totalorder %s25_s22, 2  ;;  %p115_p1 = scmp.ne.s32.totalorder %s1264_s14, %s1260_s13 }
   0x8   : > { %p116_p2 = scmp.eq.s32.totalorder %s998_s20, 3  ;;  %p121_p5 = scmp.ne.s32.totalorder %s1260_s13, %s1256_s12 }
   0x9   : > { %s1786_s22 = smov (%p26_p0, %s25_s22), 0  ;;  %s1788_s23 = smov (!%p26_p0, %s28_s23), %s1280_s18 }
   0xa   : > { %s101_s24 = ssub.s32 %s1276_s17, %s1786_s22  ;;  %p1366_p3 = por %p116_p2, %p115_p1 }
   0xb   : > { %p30_p4 = scmp.ge.s32.totalorder %s1788_s23, 2  ;;  %p122_p6 = scmp.eq.s32.totalorder %s999_s21, 3 }
   0xc   : > { %p1002_p7 = scmp.ge.s32.totalorder %s1284_s19, 1  ;;  %p154_p9 = scmp.lt.s32.totalorder %s1284_s19, 5 }
   0xd   : > { %s1790_s23 = smov (%p30_p4, %s1788_s23), 0  ;;  %p1375_p8 = por %p122_p6, %p121_p5 }
   0xe   : > { %s100_s27 = ssub.s32 %s1280_s18, %s1790_s23  ;;  %s105_s28 = sadd.s32 1, %s1264_s14 }
   0xf   : > { %s102_s29 = sor.u32 %s101_s24, %s100_s27  ;;  %p155_p10 = pnand %p1002_p7, %p154_p9 }
  0x10   : > { %p103_p11 = scmp.eq.s32.totalorder %s102_s29, 0  ;;  %p178_p12 = scmp.lt.s32.totalorder (!%p155_p10), %s1272_s16, 1  ;;  %vm395_vm0 = vcmask (!%p155_p10), 1046528   ;;  %vm282_vm1 = vsmask.f32 (!%p155_p10), 7424  ;;  %vm758_vm2 = vcmask (!%p155_p10), 1041408  }
  0x11   : > { %158 = sbr.rel (%p155_p10) target bundleno = 584 (0x248), region = 32  ;;  %s1286_s11 = smov (!%p155_p10), 12   ;;  %vm578_vm3 = vcmask (!%p155_p10), 31744   ;;  %vm595_vm4 = vcmask (!%p155_p10), 64512   ;;  %vm612_vm5 = vcmask (!%p155_p10), 97280   ;;  %vm629_vm6 = vcmask (!%p155_p10), 130048  }
  0x12   : > { %s1384_s30 = scalar_select %p103_p11, %s1264_s14, %s105_s28  }
  0x13   : > { %s1045_s5 = smul.u32 (!%p155_p10), 96, %s1268_s15  ;;  %s1287_s20 = smov (!%p155_p10), 20   ;;  %vm646_vm7 = vcmask (!%p155_p10), 162816   ;;  %vm663_vm8 = vcmask (!%p155_p10), 195584   ;;  %vm680_vm9 = vcmask (!%p155_p10), 228352   ;;  %vm697_vm10 = vcmask (!%p155_p10), 261120  }
  0x14   : > { %s1288_s21 = smov (!%p155_p10), 8   ;;  %s1289_s24 = smov (!%p155_p10), 4   ;;  %vm741_vm11 = vcmask (!%p155_p10), 293888  }
  0x15   : > { %s1290_s27 = smov (!%p155_p10), 16   ;;  %s1292_s7 = smov (!%p155_p10), 28  }
  0x16   : > { %s1293_s28 = smov (!%p155_p10), 32  }
  0x18   : > { %s179_s4 = scalar_select %p178_p12, %s1272_s16, 1 }
  0x1a   : > { %s1087_s6 = smul.u32 216, %s179_s4  ;;  %s1291_s4 = smov 24  }
  0x1c   : > { %s182_s9 = scalar_lea.vmem %s1772_s0, %s1087_s6 }
  0x1d   : > { %s1392_s10 = scalar_lea.vmem %s182_s9, %s1045_s5 }
  0x1e   : > { %v1395_v0 = vld [vmem:[%s1392_s10 + $0x18] sm:$0xff]   ;;  %v1398_v1 = vld [vmem:[%s1392_s10 + $0xc] sm:$0xff]   ;;  %v1169_v2 = vld [vmem:[%s1392_s10 + $0x14] ss:$0 sps:$4 sm:$0x11]  }
  0x1f   : > { %443 = vrot.lane.b32.xlu1 %v1395_v0, %s1286_s11  ;;  %v1404_v3 = vld [vmem:[%s1392_s10] sm:$0xff]   ;;  %441 = vrot.lane.b32.xlu0 %v1398_v1, %s1286_s11  ;;  %v399_v4 = vrot.slane %v1398_v1, 1  ;;  %v400_v5 = vrot.slane %v1169_v2, 1  ;;  %v1171_v6 = vld [vmem:[%s1392_s10 + $0x8] ss:$0 sps:$4 sm:$0x11]  }
  0x20   : > { %v396_v7 = vrot.slane %v1404_v3, 1  ;;  %v284_v8 = vshrl.u32 %v1404_v3, 16  ;;  %v286_v9 = vshll.u32 %v1404_v3, 16  ;;  %v296_v10 = vshrl.u32 %v1398_v1, 16  ;;  %v1421_v22 = vld [vmem:[%s1392_s10 + $0x24] sm:$0xff]   ;;  %v1456_v53 = vld [vmem:[%s1392_s10 + $0x54] sm:$0xff]  }
  0x21   : > { %v401_v11 = vsel %vm395_vm0, %v399_v4, %v400_v5  ;;  %v397_v12 = vrot.slane %v1171_v6, 1  ;;  %v291_v13 = vshll.u32 %v1171_v6, 16  ;;  %v1172_v14 = vld [vmem:[%s1392_s10 + $0x20] ss:$0 sps:$4 sm:$0x11]   ;;  %v298_v15 = vshll.u32 %v1398_v1, 16 }
  0x22   : > { %v288_v16 = vrot.slane %v286_v9, 1  ;;  %v303_v17 = vshll.u32 %v1169_v2, 16  ;;  %v310_v18 = vshll.u32 %v1395_v0, 16  ;;  %v402_v24 = vrot.slane %v1395_v0, 1  ;;  %v1438_v38 = vld [vmem:[%s1392_s10 + $0x48] sm:$0xff]   ;;  %v1466_v59 = vld [vmem:[%s1392_s10 + $0x60] sm:$0xff]  }
  0x23   : > { %491 = vrot.lane.b32.xlu0 %v401_v11, %s1287_s20  ;;  %v398_v19 = vsel %vm395_vm0, %v396_v7, %v397_v12  ;;  %v293_v20 = vrot.slane %v291_v13, 1  ;;  %v300_v21 = vrot.slane %v298_v15, 1  ;;  %v308_v26 = vshrl.u32 %v1395_v0, 16  ;;  %v1429_v32 = vld [vmem:[%s1392_s10 + $0x2c] ss:$0 sps:$4 sm:$0x11]  }
  0x24   : > { %420 = vrot.lane.b32.xlu1 %v398_v19, %s1288_s21  ;;  %v289_v23 = vor.u32 %v288_v16, %v284_v8  ;;  %v305_v25 = vrot.slane %v303_v17, 1  ;;  %v403_v27 = vrot.slane %v1172_v14, 1  ;;  %v312_v29 = vrot.slane %v310_v18, 1  ;;  %v1180_v45 = vld [vmem:[%s1392_s10 + $0x50] ss:$0 sps:$4 sm:$0x11]  }
  0x25   : > { %v301_v28 = vor.u32 %v300_v21, %v296_v10  ;;  %v315_v30 = vshll.u32 %v1172_v14, 16  ;;  %v322_v33 = vshll.u32 %v1421_v22, 16  ;;  %v320_v39 = vshrl.u32 %v1421_v22, 16  ;;  %v1182_v55 = vld [vmem:[%s1392_s10 + $0x5c] ss:$0 sps:$4 sm:$0x11]  }
  0x26   : > { %v294_v31 = vsel %vm282_vm1, %v289_v23, %v293_v20  ;;  %v1435_v35 = vsel %vm395_vm0, %v402_v24, %v403_v27  ;;  %v313_v36 = vor.u32 %v312_v29, %v308_v26  ;;  %v327_v41 = vshll.u32 %v1429_v32, 16  ;;  %v1469_v60 = vld [vmem:[%s1392_s10 + $0x6c] sm:$0xff]   ;;  %v1187_v4 = vld [vmem:[%s1773_s1] sm:$0xff]   ;;  %v1184_v7 = vld [vmem:[%s1392_s10 + $0x68] ss:$0 sps:$4 sm:$0x11]  }
  0x27   : > { %379 = vrot.lane.b32.xlu0 %v294_v31, %s1289_s24  ;;  %v306_v34 = vsel %vm282_vm1, %v301_v28, %v305_v25  ;;  %v317_v37 = vrot.slane %v315_v30, 1  ;;  %v324_v40 = vrot.slane %v322_v33, 1  ;;  %v405_v43 = vrot.slane %v1421_v22, 1  ;;  %1057 = vmatprep.subr.bf16.mxu0 %v1187_v4  ;;  %v1188_v14 = vld [vmem:[%s1773_s1 + $0x8] sm:$0xff]   ;;  %v1514_v33 = vld [vmem:[%s1392_s10 + $0x30] sm:$0xff]  }
  0x28   : > { %422 = vrot.lane.b32.xlu1 %v401_v11, %s1288_s21  ;;  %v406_v44 = vrot.slane %v1429_v32, 1  ;;  %v356_v46 = vshrl.u32 %v1438_v38, 16  ;;  %v358_v47 = vshll.u32 %v1438_v38, 16  ;;  %v414_v48 = vrot.slane %v1438_v38, 1  ;;  %1058 = vmatpush3.bf16.msra.mxu0 %v1187_v4 }
  0x29   : > { %v1446_v42 = vsel %vm282_vm1, %v313_v36, %v317_v37  ;;  %v325_v49 = vor.u32 %v324_v40, %v320_v39  ;;  %v329_v50 = vrot.slane %v327_v41, 1  ;;  %v363_v51 = vshll.u32 %v1180_v45, 16  ;;  %1079 = vmatprep.subr.bf16.mxu1 %v1187_v4  ;;  %v1186_v20 = vld [vmem:[%s1392_s10 + $0x74] ss:$0 sps:$4 sm:$0x11]   ;;  %1059 = vmatprep.subr.bf16.mxu0 %v1188_v14 }
  0x2a   : > { %v415_v52 = vrot.slane %v1180_v45, 1  ;;  %v360_v54 = vrot.slane %v358_v47, 1  ;;  %v368_v58 = vshrl.u32 %v1456_v53, 16  ;;  %v370_v62 = vshll.u32 %v1456_v53, 16  ;;  %1082 = vmatpush3.bf16.msra.mxu1 %v1187_v4 }
  0x2b   : > { %381 = vrot.lane.b32.xlu0 %v306_v34, %s1289_s24  ;;  %v365_v56 = vrot.slane %v363_v51, 1  ;;  %v375_v63 = vshll.u32 %v1182_v55, 16  ;;  %v417_v2 = vrot.slane %v1456_v53, 1  ;;  %v1479_v5 = vsel %vm282_vm1, %v325_v49, %v329_v50  ;;  %1080 = vmatprep.subr.bf16.mxu1 %v1188_v14  ;;  %v1189_v31 = vld [vmem:[%s1773_s1 + $0x10] ss:$0 sps:$4 sm:$0x33]  }
  0x2c   : > { %493 = vrot.lane.b32.xlu1 %v1435_v35, %s1287_s20  ;;  %v1462_v57 = vsel %vm395_vm0, %v414_v48, %v415_v52  ;;  %v361_v61 = vor.u32 %v360_v54, %v356_v46  ;;  %v418_v6 = vrot.slane %v1182_v55, 1  ;;  %v461_v8 = vshrl.u32 %v1466_v59, 16  ;;  %1060 = vmatpush3.bf16.msra.mxu0 %v1188_v14  ;;  %v1176_v46 = vld [vmem:[%s1392_s10 + $0x38] ss:$0 sps:$4 sm:$0x11]   ;;  %v1544_v50 = vld [vmem:[%s1392_s10 + $0x3c] sm:$0xff]  }
  0x2d   : > { %v463_v9 = vshll.u32 %v1466_v59, 16  ;;  %v372_v11 = vrot.slane %v370_v62, 1  ;;  %v377_v12 = vrot.slane %v375_v63, 1  ;;  %v488_v13 = vrot.slane %v1466_v59, 1  ;;  %1085 = vmatprep.subr.msk.bf16.mxu0 %vm758_vm2, %v1189_v31 }
  0x2e   : > { %v1487_v10 = vsel %vm282_vm1, %v361_v61, %v365_v56  ;;  %v1494_v15 = vsel %vm395_vm0, %v417_v2, %v418_v6  ;;  %v468_v17 = vshll.u32 %v1184_v7, 16  ;;  %v489_v18 = vrot.slane %v1184_v7, 1  ;;  %1083 = vmatpush3.bf16.msra.mxu1 %v1188_v14  ;;  %v1178_v55 = vld [vmem:[%s1392_s10 + $0x44] ss:$0 sps:$4 sm:$0x11]  }
  0x2f   : > { %472 = vrot.lane.b32.xlu0 %v306_v34, %s1290_s27  ;;  %v465_v16 = vrot.slane %v463_v9, 1  ;;  %v373_v19 = vor.u32 %v372_v11, %v368_v58  ;;  %v532_v21 = vshrl.u32 %v1469_v60, 16  ;;  %v534_v26 = vshll.u32 %v1469_v60, 16  ;;  %1086 = vmatprep.subr.msk.bf16.mxu1 %vm758_vm2, %v1189_v31 }
  0x30   : > { %474 = vrot.lane.b32.xlu1 %v1446_v42, %s1290_s27  ;;  %v470_v24 = vrot.slane %v468_v17, 1  ;;  %v1501_v25 = vsel %vm395_vm0, %v488_v13, %v489_v18  ;;  %v539_v28 = vshll.u32 %v1186_v20, 16  ;;  %v559_v29 = vrot.slane %v1469_v60, 1 }
  0x31   : > { %v466_v23 = vor.u32 %v465_v16, %v461_v8  ;;  %v1507_v27 = vsel %vm282_vm1, %v373_v19, %v377_v12  ;;  %v560_v30 = vrot.slane %v1186_v20, 1  ;;  %v536_v36 = vrot.slane %v534_v26, 1 }
  0x32   : > { %v541_v37 = vrot.slane %v539_v28, 1  ;;  %v407_v41 = vsel %vm395_vm0, %v405_v43, %v406_v44  ;;  %v760_v45 = vsel %vm758_vm2, %v1189_v31, 0  ;;  %v334_v47 = vshll.u32 %v1514_v33, 16 }
  0x33   : > { %512 = vrot.lane.b32.xlu0 %v1395_v0, %s1291_s4  ;;  %v1517_v34 = vsel %vm282_vm1, %v466_v23, %v470_v24  ;;  %v1520_v39 = vsel %vm395_vm0, %v559_v29, %v560_v30  ;;  %v537_v40 = vor.u32 %v536_v36, %v532_v21  ;;  %1062 = vmatpush3.bf16.msra.mxu0 %v760_v45  ;;  %v332_v32 = vshrl.u32 %v1514_v33, 16 }
  0x34   : > { %514 = vrot.lane.b32.xlu1 %v1421_v22, %s1291_s4  ;;  %1084 = vmatpush3.bf16.msra.mxu1 %v760_v45  ;;  %v339_v43 = vshll.u32 %v1176_v46, 16  ;;  %v408_v52 = vrot.slane %v1514_v33, 1  ;;  %v409_v54 = vrot.slane %v1176_v46, 1  ;;  %v344_v58 = vshrl.u32 %v1544_v50, 16 }
  0x35   : > { %v1534_v48 = vsel %vm282_vm1, %v537_v40, %v541_v37  ;;  %v351_v62 = vshll.u32 %v1178_v55, 16  ;;  %v412_v6 = vrot.slane %v1178_v55, 1 }
  0x36   : > { %v341_v49 = vrot.slane %v339_v43, 1  ;;  %v410_v56 = vsel %vm395_vm0, %v408_v52, %v409_v54 }
  0x37   : > { %543 = vrot.lane.b32.xlu0 %v1446_v42, %s1292_s7  ;;  %v353_v2 = vrot.slane %v351_v62, 1 }
  0x38   : > { %545 = vrot.lane.b32.xlu1 %v1479_v5, %s1292_s7 }
  0x3b   : > { %562 = vrot.lane.b32.xlu0 %v1435_v35, %s1293_s28 }
  0x3c   : > { %383 = vrot.lane.b32.xlu1 %v1446_v42, %s1289_s24  ;;  %v336_v42 = vrot.slane %v334_v47, 1 }
  0x3e   : > { %v337_v44 = vor.u32 %v336_v42, %v332_v32 }
  0x3f   : > { %564 = vrot.lane.b32.xlu0 %v407_v41, %s1293_s28 }
  0x40   : > { %385 = vrot.lane.b32.xlu1 %v1479_v5, %s1289_s24  ;;  %v342_v51 = vsel %vm282_vm1, %v337_v44, %v341_v49 }
  0x43   : > { %424 = vrot.lane.b32.xlu0 %v1435_v35, %s1288_s21  ;;  %v346_v35 = vshll.u32 %v1544_v50, 16 }
  0x44   : > { %426 = vrot.lane.b32.xlu1 %v407_v41, %s1288_s21 }
  0x45   : > { %v348_v61 = vrot.slane %v346_v35, 1 }
  0x47   : > { %445 = vrot.lane.b32.xlu0 %v1421_v22, %s1286_s11  ;;  %v349_v63 = vor.u32 %v348_v61, %v344_v58 }
  0x48   : > { %447 = vrot.lane.b32.xlu1 %v1514_v33, %s1286_s11 }
  0x49   : > { %v354_v4 = vsel %vm282_vm1, %v349_v63, %v353_v2 }
  0x4b   : > { %476 = vrot.lane.b32.xlu0 %v1479_v5, %s1290_s27  ;;  %v411_v5 = vrot.slane %v1544_v50, 1 }
  0x4c   : > { %478 = vrot.lane.b32.xlu1 %v342_v51, %s1290_s27 }
  0x4d   : > { %v413_v7 = vsel %vm395_vm0, %v411_v5, %v412_v6 }
  0x4f   : > { %495 = vrot.lane.b32.xlu0 %v407_v41, %s1287_s20 }
  0x50   : > { %497 = vrot.lane.b32.xlu1 %v410_v56, %s1287_s20 }
  0x53   : > { %516 = vrot.lane.b32.xlu0 %v1514_v33, %s1291_s4 }
  0x54   : > { %518 = vrot.lane.b32.xlu1 %v1544_v50, %s1291_s4 }
  0x57   : > { %547 = vrot.lane.b32.xlu0 %v342_v51, %s1292_s7 }
  0x58   : > { %549 = vrot.lane.b32.xlu1 %v354_v4, %s1292_s7 }
  0x5b   : > { %566 = vrot.lane.b32.xlu0 %v410_v56, %s1293_s28 }
  0x5c   : > { %387 = vrot.lane.b32.xlu1 %v342_v51, %s1289_s24 }
  0x5f   : > { %568 = vrot.lane.b32.xlu0 %v413_v7, %s1293_s28 }
  0x60   : > { %389 = vrot.lane.b32.xlu1 %v354_v4, %s1289_s24 }
  0x63   : > { %428 = vrot.lane.b32.xlu0 %v410_v56, %s1288_s21 }
  0x64   : > { %430 = vrot.lane.b32.xlu1 %v413_v7, %s1288_s21 }
  0x67   : > { %449 = vrot.lane.b32.xlu0 %v1544_v50, %s1286_s11 }
  0x68   : > { %451 = vrot.lane.b32.xlu1 %v1438_v38, %s1286_s11 }
  0x6b   : > { %480 = vrot.lane.b32.xlu0 %v354_v4, %s1290_s27 }
  0x6c   : > { %482 = vrot.lane.b32.xlu1 %v1487_v10, %s1290_s27 }
  0x6f   : > { %499 = vrot.lane.b32.xlu0 %v413_v7, %s1287_s20 }
  0x70   : > { %501 = vrot.lane.b32.xlu1 %v1462_v57, %s1287_s20 }
  0x73   : > { %520 = vrot.lane.b32.xlu0 %v1438_v38, %s1291_s4 }
  0x74   : > { %522 = vrot.lane.b32.xlu1 %v1456_v53, %s1291_s4 }
  0x77   : > { %551 = vrot.lane.b32.xlu0 %v1487_v10, %s1292_s7 }
  0x78   : > { %553 = vrot.lane.b32.xlu1 %v1507_v27, %s1292_s7 }
  0x7b   : > { %570 = vrot.lane.b32.xlu0 %v1462_v57, %s1293_s28 }
  0x7c   : > { %391 = vrot.lane.b32.xlu1 %v1487_v10, %s1289_s24 }
  0x7f   : > { %572 = vrot.lane.b32.xlu0 %v1494_v15, %s1293_s28 }
  0x80   : > { %393 = vrot.lane.b32.xlu1 %v1507_v27, %s1289_s24  ;;  %s1041_s24 = sshll.u32 %s1272_s16, 1 }
  0x83   : > { %432 = vrot.lane.b32.xlu0 %v1462_v57, %s1288_s21 }
  0x84   : > { %434 = vrot.lane.b32.xlu1 %v1494_v15, %s1288_s21 }
  0x87   : > { %453 = vrot.lane.b32.xlu0 %v1456_v53, %s1286_s11 }
  0x88   : > { %455 = vrot.lane.b32.xlu1 %v1466_v59, %s1286_s11 }
  0x8b   : > { %484 = vrot.lane.b32.xlu0 %v1507_v27, %s1290_s27 }
  0x8c   : > { %486 = vrot.lane.b32.xlu1 %v1517_v34, %s1290_s27  ;;  %s920_s27 = sadd.s32 %s1268_s15, %s1041_s24  ;;  %s1294_s15 = smov [#allocation2]  }
  0x8d   : > { %s1042_s5 = sshll.u32 %s920_s27, 7  ;;  %s1194_s16 = sshll.u32 %s1294_s15, 4  ;;  %s1195_s16 = int_to_ptr.vmem [resolvable:$false] %s1194_s16 }
  0x8e   : > { %s1721_s8 = scalar_lea.hbm %s1775_s3, %s1042_s5  ;;  %s1196_s10 = scalar_lea.vmem %s1195_s16, 256 }
  0x8f   : > { %503 = vrot.lane.b32.xlu0 %v1494_v15, %s1287_s20 }
  0x90   : > { %505 = vrot.lane.b32.xlu1 %v1501_v25, %s1287_s20  ;;  %s175_s20 = sand.u32 1, %s1260_s13  }
  0x91   : > { %v444_v57 = vpop.permute.xlu1 %443  ;;  %v442_v8 = vpop.permute.xlu0 %441  ;;  %s1003_s21 = sshll.u32 %s175_s20, 3  ;;  %s909_s9 = scalar_lea.sflag [#allocation3], %s175_s20 }
  0x92   : > { %s177_s29 = scalar_lea.vmem [#allocation2], %s1003_s21 }
  0x93   : > { %524 = vrot.lane.b32.xlu0 %v1466_v59, %s1291_s4 }
  0x94   : > { %526 = vrot.lane.b32.xlu1 %v1469_v60, %s1291_s4  ;;  %s924_s4 = sshll.u32 %s177_s29, 4  ;;  %s1716_s4 = int_to_ptr.vmem [resolvable:$true] %s924_s4 }
  0x95   : > { %v492_v9 = vpop.permute.xlu0 %491  ;;  %p1197_p2 = scmp.lt.s32.totalorder %s1716_s4, %s1195_s16 }
  0x96   : > { %v421_v10 = vpop.permute.xlu1 %420 }
  0x97   : > { %555 = vrot.lane.b32.xlu0 %v1517_v34, %s1292_s7 }
  0x98   : > { %557 = vrot.lane.b32.xlu1 %v1534_v48, %s1292_s7 }
  0x99   : > { %v380_v11 = vpop.permute.xlu0 %379 }
  0x9a   : > { %v423_v12 = vpop.permute.xlu1 %422  ;;  %v580_v60 = vsel %vm578_vm3, %v1404_v3, %v380_v11 }
  0x9b   : > { %574 = vrot.lane.b32.xlu0 %v1501_v25, %s1293_s28  ;;  %v597_v17 = vsel %vm595_vm4, %v580_v60, %v421_v10 }
  0x9c   : > { %576 = vrot.lane.b32.xlu1 %v1520_v39, %s1293_s28  ;;  %v614_v21 = vsel %vm612_vm5, %v597_v17, %v442_v8  ;;  %s1190_s28 = scalar_lea.vmem %s1716_s4, 128 }
  0x9d   : > { %v382_v59 = vpop.permute.xlu0 %381  ;;  %p1191_p13 = scmp.ne.s32.totalorder %s1716_s4, %s1190_s28  ;;  %p1198_p4 = scmp.lt.s32.totalorder %s1196_s10, %s1190_s28 }
  0x9e   : > { %v494_v13 = vpop.permute.xlu1 %493  ;;  %v582_v16 = vsel %vm578_vm3, %v1398_v1, %v382_v59 }
  0x9f   : > { %v599_v19 = vsel %vm595_vm4, %v582_v16, %v423_v12  ;;  %p1192_p0 = pnand %p1191_p13, %p1366_p3  ;;  %p1199_p5 = por %p1198_p4, %p1197_p2 }
  0xa0   : > { %v616_v3 = vsel %vm612_vm5, %v599_v19, %v444_v57 }
  0xa1   : > { %v473_v14 = vpop.permute.xlu0 %472  ;;  %p1193_p1 = pneg %p1192_p0 }
  0xa2   : > { %v475_v15 = vpop.permute.xlu1 %474  ;;  %v631_v23 = vsel %vm629_vm6, %v614_v21, %v473_v14 }
  0xa3   : > { %v648_v1 = vsel %vm646_vm7, %v631_v23, %v492_v9  ;;  %v633_v26 = vsel %vm629_vm6, %v616_v3, %v475_v15  ;;  %p1200_p6 = pnand %p1199_p5, %p1193_p1 }
  0xa4   : > { %v650_v34 = vsel %vm646_vm7, %v633_v26, %v494_v13 }
  0xa5   : > { %v513_v18 = vpop.permute.xlu0 %512 }
  0xa6   : > { %v515_v20 = vpop.permute.xlu1 %514  ;;  %v665_v27 = vsel %vm663_vm8, %v648_v1, %v513_v18 }
  0xa7   : > { %v667_v36 = vsel %vm663_vm8, %v650_v34, %v515_v20 }
  0xa9   : > { %v544_v24 = vpop.permute.xlu0 %543 }
  0xaa   : > { %v546_v25 = vpop.permute.xlu1 %545  ;;  %v682_v28 = vsel %vm680_vm9, %v665_v27, %v544_v24 }
  0xab   : > { %v684_v37 = vsel %vm680_vm9, %v667_v36, %v546_v25 }
  0xad   : > { %v563_v29 = vpop.permute.xlu0 %562 }
  0xae   : > { %v384_v30 = vpop.permute.xlu1 %383  ;;  %v699_v31 = vsel %vm697_vm10, %v682_v28, %v563_v29 }
  0xaf   : > { %1063 = vmatprep.mubr.msk.bf16.mxu0 %vm741_vm11, %v699_v31  ;;  %v584_v52 = vsel %vm578_vm3, %v1395_v0, %v384_v30 }
  0xb1   : > { %v565_v39 = vpop.permute.xlu0 %564 }
  0xb2   : > { %v386_v40 = vpop.permute.xlu1 %385  ;;  %v701_v41 = vsel %vm697_vm10, %v684_v37, %v565_v39 }
  0xb3   : > { %1064 = vmatmul.mubr.msk.bf16.vlgmr.msra.gmra.mrb[0].mxu0 %vm741_vm11, %v701_v41  ;;  %v586_v61 = vsel %vm578_vm3, %v1421_v22, %v386_v40 }
  0xb5   : > { %v425_v45 = vpop.permute.xlu0 %424 }
  0xb6   : > { %v427_v46 = vpop.permute.xlu1 %426  ;;  %v601_v54 = vsel %vm595_vm4, %v584_v52, %v425_v45 }
  0xb7   : > { %v603_v63 = vsel %vm595_vm4, %v586_v61, %v427_v46 }
  0xb9   : > { %v446_v47 = vpop.permute.xlu0 %445 }
  0xba   : > { %v448_v48 = vpop.permute.xlu1 %447  ;;  %v618_v55 = vsel %vm612_vm5, %v601_v54, %v446_v47 }
  0xbb   : > { %v620_v4 = vsel %vm612_vm5, %v603_v63, %v448_v48 }
  0xbd   : > { %v477_v32 = vpop.permute.xlu0 %476 }
  0xbe   : > { %v479_v42 = vpop.permute.xlu1 %478  ;;  %v635_v56 = vsel %vm629_vm6, %v618_v55, %v477_v32 }
  0xbf   : > { %v637_v6 = vsel %vm629_vm6, %v620_v4, %v479_v42 }
  0xc1   : > { %v496_v43 = vpop.permute.xlu0 %495 }
  0xc2   : > { %v498_v44 = vpop.permute.xlu1 %497  ;;  %v652_v62 = vsel %vm646_vm7, %v635_v56, %v496_v43 }
  0xc3   : > { %v654_v8 = vsel %vm646_vm7, %v637_v6, %v498_v44 }
  0xc5   : > { %v517_v49 = vpop.permute.xlu0 %516 }
  0xc6   : > { %v519_v51 = vpop.permute.xlu1 %518  ;;  %v669_v2 = vsel %vm663_vm8, %v652_v62, %v517_v49 }
  0xc7   : > { %v671_v22 = vsel %vm663_vm8, %v654_v8, %v519_v51 }
  0xc9   : > { %v548_v35 = vpop.permute.xlu0 %547 }
  0xca   : > { %v550_v58 = vpop.permute.xlu1 %549  ;;  %v686_v0 = vsel %vm680_vm9, %v669_v2, %v548_v35 }
  0xcb   : > { %v688_v9 = vsel %vm680_vm9, %v671_v22, %v550_v58 }
  0xcd   : > { %v567_v5 = vpop.permute.xlu0 %566 }
  0xce   : > { %v388_v7 = vpop.permute.xlu1 %387  ;;  %v703_v57 = vsel %vm697_vm10, %v686_v0, %v567_v5 }
  0xcf   : > { %1067 = vmatprep.mubr.msk.bf16.mxu0 %vm741_vm11, %v703_v57  ;;  %v588_v21 = vsel %vm578_vm3, %v1514_v33, %v388_v7 }
  0xd1   : > { %v569_v10 = vpop.permute.xlu0 %568 }
  0xd2   : > { %v390_v11 = vpop.permute.xlu1 %389  ;;  %v705_v12 = vsel %vm697_vm10, %v688_v9, %v569_v10 }
  0xd3   : > { %1068 = vmatmul.mubr.msk.bf16.gmra.mrb[4].mxu0 %vm741_vm11, %v705_v12  ;;  %v590_v26 = vsel %vm578_vm3, %v1544_v50, %v390_v11  ;;  %v1028_v11 = vld [vmem:[%s1774_s2] ss:$0 sm:$0xff] }
  0xd5   : > { %v429_v59 = vpop.permute.xlu0 %428 }
  0xd6   : > { %v431_v13 = vpop.permute.xlu1 %430  ;;  %v605_v23 = vsel %vm595_vm4, %v588_v21, %v429_v59 }
  0xd7   : > { %v607_v28 = vsel %vm595_vm4, %v590_v26, %v431_v13 }
  0xd9   : > { %v450_v60 = vpop.permute.xlu0 %449 }
  0xda   : > { %v452_v14 = vpop.permute.xlu1 %451  ;;  %v622_v3 = vsel %vm612_vm5, %v605_v23, %v450_v60 }
  0xdb   : > { %v624_v30 = vsel %vm612_vm5, %v607_v28, %v452_v14 }
  0xdd   : > { %v481_v15 = vpop.permute.xlu0 %480 }
  0xde   : > { %v483_v16 = vpop.permute.xlu1 %482  ;;  %v639_v25 = vsel %vm629_vm6, %v622_v3, %v481_v15 }
  0xdf   : > { %v641_v34 = vsel %vm629_vm6, %v624_v30, %v483_v16 }
  0xe1   : > { %v500_v17 = vpop.permute.xlu0 %499 }
  0xe2   : > { %v502_v18 = vpop.permute.xlu1 %501  ;;  %v656_v27 = vsel %vm646_vm7, %v639_v25, %v500_v17 }
  0xe3   : > { %v658_v39 = vsel %vm646_vm7, %v641_v34, %v502_v18 }
  0xe5   : > { %v521_v19 = vpop.permute.xlu0 %520 }
  0xe6   : > { %v523_v20 = vpop.permute.xlu1 %522  ;;  %v673_v29 = vsel %vm663_vm8, %v656_v27, %v521_v19 }
  0xe7   : > { %v675_v50 = vsel %vm663_vm8, %v658_v39, %v523_v20 }
  0xe9   : > { %v552_v24 = vpop.permute.xlu0 %551 }
  0xea   : > { %v554_v1 = vpop.permute.xlu1 %553  ;;  %v690_v33 = vsel %vm680_vm9, %v673_v29, %v552_v24 }
  0xeb   : > { %v692_v40 = vsel %vm680_vm9, %v675_v50, %v554_v1 }
  0xed   : > { %v571_v31 = vpop.permute.xlu0 %570 }
  0xee   : > { %v392_v36 = vpop.permute.xlu1 %391  ;;  %v707_v37 = vsel %vm697_vm10, %v690_v33, %v571_v31 }
  0xef   : > { %1071 = vmatprep.mubr.msk.bf16.mxu1 %vm741_vm11, %v707_v37  ;;  %v592_v55 = vsel %vm578_vm3, %v1438_v38, %v392_v36 }
  0xf1   : > { %v573_v41 = vpop.permute.xlu0 %572 }
  0xf2   : > { %v394_v45 = vpop.permute.xlu1 %393  ;;  %v709_v46 = vsel %vm697_vm10, %v692_v40, %v573_v41 }
  0xf3   : > { %1072 = vmatmul.mubr.msk.bf16.vlgmr.msra.gmra.mrb[0].mxu1 %vm741_vm11, %v709_v46  ;;  %v594_v35 = vsel %vm578_vm3, %v1456_v53, %v394_v45 }
  0xf5   : > { %v433_v47 = vpop.permute.xlu0 %432 }
  0xf6   : > { %v435_v48 = vpop.permute.xlu1 %434  ;;  %v609_v56 = vsel %vm595_vm4, %v592_v55, %v433_v47 }
  0xf7   : > { %v611_v58 = vsel %vm595_vm4, %v594_v35, %v435_v48 }
  0xf9   : > { %v454_v32 = vpop.permute.xlu0 %453 }
  0xfa   : > { %v456_v42 = vpop.permute.xlu1 %455  ;;  %v626_v61 = vsel %vm612_vm5, %v609_v56, %v454_v32 }
  0xfb   : > { %v628_v63 = vsel %vm612_vm5, %v611_v58, %v456_v42 }
  0xfd   : > { %v485_v43 = vpop.permute.xlu0 %484 }
  0xfe   : > { %v487_v44 = vpop.permute.xlu1 %486  ;;  %v643_v2 = vsel %vm629_vm6, %v626_v61, %v485_v43 }
  0xff   : > { %v645_v0 = vsel %vm629_vm6, %v628_v63, %v487_v44 }
 0x101   : > { %v504_v49 = vpop.permute.xlu0 %503 }
 0x102   : > { %v506_v51 = vpop.permute.xlu1 %505  ;;  %v660_v5 = vsel %vm646_vm7, %v643_v2, %v504_v49 }
 0x103   : > { %v662_v38 = vsel %vm646_vm7, %v645_v0, %v506_v51 }
 0x105   : > { %v525_v52 = vpop.permute.xlu0 %524 }
 0x106   : > { %v527_v54 = vpop.permute.xlu1 %526  ;;  %v677_v53 = vsel %vm663_vm8, %v660_v5, %v525_v52 }
 0x107   : > { %v679_v6 = vsel %vm663_vm8, %v662_v38, %v527_v54 }
 0x109   : > { %v556_v62 = vpop.permute.xlu0 %555 }
 0x10a   : > { %v558_v4 = vpop.permute.xlu1 %557  ;;  %v694_v7 = vsel %vm680_vm9, %v677_v53, %v556_v62 }
 0x10b   : > { %v696_v8 = vsel %vm680_vm9, %v679_v6, %v558_v4 }
 0x10d   : > { %v575_v57 = vpop.permute.xlu0 %574 }
 0x10e   : > { %v577_v22 = vpop.permute.xlu1 %576  ;;  %v711_v9 = vsel %vm697_vm10, %v694_v7, %v575_v57 }
 0x10f   : > { %v713_v10 = vsel %vm697_vm10, %v696_v8, %v577_v22  ;;  %1075 = vmatprep.mubr.msk.bf16.mxu1 %vm741_vm11, %v711_v9 }
 0x110   : > { %1076 = vmatmul.mubr.msk.bf16.gmra.mrb[4].mxu1 %vm741_vm11, %v713_v10 }
 0x186   : > { %v1065_v12 = vpop.f32.mrb[0].mxu0 }
 0x187   : > { %v796_v59 = vpop.f32.mrb[1].mxu0  ;;  %v805_v17 = vadd.f32 %v1065_v12, %v1028_v11 }
 0x188   : > { %v797_v13 = vadd.f32 %v1028_v11, %v796_v59  ;;  %v1066_v60 = vpop.f32.mrb[2].mxu0 }
 0x189   : > { %v799_v14 = vpop.f32.mrb[3].mxu0  ;;  %v861_v19 = vmax.f32 %v805_v17, 0.0  ;;  %v808_v20 = vadd.f32 %v1066_v60, %v1028_v11 }
 0x18a   : > { %v859_v15 = vmax.f32 %v797_v13, 0.0  ;;  %v800_v16 = vadd.f32 %v1028_v11, %v799_v14 }
 0x18b   : > { %v862_v21 = vmax.f32 %v808_v20, 0.0 }
 0x18c   : > { %875 = vxpose.xlu0.b32.start [1/16] (narrow) %v859_v15, 8  ;;  %v860_v18 = vmax.f32 %v800_v16, 0.0 }
 0x190   : > { %876 = vxpose.xlu0.b32.cont [2/16] (narrow) %v860_v18, 8 }
 0x194   : > { %877 = vxpose.xlu0.b32.cont [3/16] (narrow) %v861_v19, 8 }
 0x198   : > { %878 = vxpose.xlu0.b32.cont [4/16] (narrow) %v862_v21, 8 }
 0x1a6   : > { %v1069_v23 = vpop.f32.mrb[4].mxu0 }
 0x1a7   : > { %v812_v3 = vpop.f32.mrb[5].mxu0  ;;  %v821_v28 = vadd.f32 %v1069_v23, %v1028_v11 }
 0x1a8   : > { %v813_v24 = vadd.f32 %v1028_v11, %v812_v3  ;;  %v1070_v25 = vpop.f32.mrb[6].mxu0 }
 0x1a9   : > { %v815_v1 = vpop.f32.mrb[7].mxu0  ;;  %v865_v30 = vmax.f32 %v821_v28, 0.0  ;;  %v824_v33 = vadd.f32 %v1070_v25, %v1028_v11 }
 0x1aa   : > { %v863_v26 = vmax.f32 %v813_v24, 0.0  ;;  %v816_v27 = vadd.f32 %v1028_v11, %v815_v1 }
 0x1ab   : > { %v866_v31 = vmax.f32 %v824_v33, 0.0 }
 0x1ac   : > { %879 = vxpose.xlu0.b32.cont [5/16] (narrow) %v863_v26, 8  ;;  %v864_v29 = vmax.f32 %v816_v27, 0.0 }
 0x1b0   : > { %880 = vxpose.xlu0.b32.cont [6/16] (narrow) %v864_v29, 8 }
 0x1b4   : > { %881 = vxpose.xlu0.b32.cont [7/16] (narrow) %v865_v30, 8 }
 0x1b8   : > { %882 = vxpose.xlu0.b32.cont [8/16] (narrow) %v866_v31, 8 }
 0x1c6   : > { %v1073_v34 = vpop.f32.mrb[0].mxu1 }
 0x1c7   : > { %v828_v36 = vpop.f32.mrb[1].mxu1  ;;  %v837_v45 = vadd.f32 %v1073_v34, %v1028_v11 }
 0x1c8   : > { %v829_v37 = vadd.f32 %v1028_v11, %v828_v36  ;;  %v1074_v39 = vpop.f32.mrb[2].mxu1 }
 0x1c9   : > { %v831_v50 = vpop.f32.mrb[3].mxu1  ;;  %v869_v47 = vmax.f32 %v837_v45, 0.0  ;;  %v840_v48 = vadd.f32 %v1074_v39, %v1028_v11 }
 0x1ca   : > { %v867_v40 = vmax.f32 %v829_v37, 0.0  ;;  %v832_v41 = vadd.f32 %v1028_v11, %v831_v50 }
 0x1cb   : > { %v870_v32 = vmax.f32 %v840_v48, 0.0 }
 0x1cc   : > { %883 = vxpose.xlu0.b32.cont [9/16] (narrow) %v867_v40, 8  ;;  %v868_v46 = vmax.f32 %v832_v41, 0.0 }
 0x1d0   : > { %884 = vxpose.xlu0.b32.cont [10/16] (narrow) %v868_v46, 8 }
 0x1d4   : > { %885 = vxpose.xlu0.b32.cont [11/16] (narrow) %v869_v47, 8 }
 0x1d8   : > { %886 = vxpose.xlu0.b32.cont [12/16] (narrow) %v870_v32, 8 }
 0x1e3   : > { %v1077_v42 = vpop.f32.mrb[4].mxu1 }
 0x1e4   : > { %v844_v43 = vpop.f32.mrb[5].mxu1  ;;  %v853_v55 = vadd.f32 %v1077_v42, %v1028_v11 }
 0x1e5   : > { %v845_v44 = vadd.f32 %v1028_v11, %v844_v43  ;;  %v1078_v49 = vpop.f32.mrb[6].mxu1 }
 0x1e6   : > { %v847_v51 = vpop.f32.mrb[7].mxu1  ;;  %v873_v56 = vmax.f32 %v853_v55, 0.0  ;;  %v856_v58 = vadd.f32 %v1078_v49, %v1028_v11 }
 0x1e7   : > { %v871_v52 = vmax.f32 %v845_v44, 0.0  ;;  %v848_v54 = vadd.f32 %v1028_v11, %v847_v51 }
 0x1e8   : > { %v874_v61 = vmax.f32 %v856_v58, 0.0 }
 0x1e9   : > { %887 = vxpose.xlu0.b32.cont [13/16] (narrow) %v871_v52, 8  ;;  %v872_v35 = vmax.f32 %v848_v54, 0.0 }
 0x1ed   : > { %888 = vxpose.xlu0.b32.cont [14/16] (narrow) %v872_v35, 8 }
 0x1f1   : > { %889 = vxpose.xlu0.b32.cont [15/16] (narrow) %v873_v56, 8 }
 0x1f5   : > { %890 = vxpose.xlu0.b32.end [16/16] (narrow) %v874_v61, 8 }
 0x239   : > { %v891_v62 = vpop.trf.xlu0 }
 0x23a   : > { %907 = vst [vmem:[%s177_s29] sm:$0xff] %v891_v62 }
 0x23b   : > { %1203 = shalt.err (!%p1200_p6)
}
 0x23c   : > { %s1204_s11 = scalar_lea.hbm %s1721_s8, 128  ;;  %s1208_s24 = scalar_lea.hbm %s1775_s3, 512 }
 0x23d   : > { %p1205_p7 = scmp.ne.s32.totalorder %s1721_s8, %s1204_s11  ;;  %p1209_p11 = scmp.lt.u32.totalorder %s1721_s8, %s1775_s3 }
 0x23e   : > { %p1210_p12 = scmp.lt.u32.totalorder %s1208_s24, %s1204_s11  ;;  %p1212_p0 = scmp.lt.u32.totalorder %s1204_s11, %s1721_s8 }
 0x23f   : > { %p1206_p9 = pnand %p1205_p7, %p1366_p3 }
 0x240   : > { %p1211_p13 = por %p1210_p12, %p1209_p11 }
 0x241   : > { %p1207_p10 = pneg %p1206_p9 }
 0x242   : > { %p1213_p1 = por %p1212_p0, %p1211_p13 }
 0x244   : > { %p1214_p2 = pnand %p1213_p1, %p1207_p10 }
 0x246   : > { %1217 = shalt.err (!%p1214_p2)
}
 0x247   : > { %1088 = dma.vmem_to_hbm [thread:$0]  (%p1366_p3), %s1716_s4, 128, %s1721_s8, %s909_s9  }
 0x248 PF: > { %p1094_p4 = scmp.ge.s32.totalorder %s1284_s19, 2  ;;  %s936_s5 = sand.u32 1, %s1256_s12  }
 0x249   : > { %s937_s6 = scalar_lea.sflag [#allocation3], %s936_s5 }
 0x24a   : > { %p1091_p5 = pnand %p1094_p4, %p1375_p8 }
 0x24c   : > { %1251 = dma.done.wait (!%p1091_p5), %s937_s6, 128  }
 0x24d   : > { %1253 = vsyncadd (!%p1091_p5), %s937_s6, 4294967168  ;;  %s16_s19 = sadd.s32 1, %s1284_s19   ;;  %s1778_s12 = smov %s1260_s13 }
 0x24e   : > { %p13_p6 = scmp.ge.s32.totalorder %s16_s19, 6   ;;  %s1779_s13 = smov %s1264_s14 }
 0x24f   : > { %s1780_s14 = smov %s1384_s30  ;;  %s1781_s15 = smov %s1276_s17 }
 0x250   : > { %s1782_s16 = smov %s1280_s18  ;;  %s1783_s17 = smov %s1786_s22 }
 0x251   : > { %s1784_s18 = smov %s1790_s23  ;;  %15 = sbr.rel (!%p13_p6) target bundleno = 5 (0x5), region = 68 }
 0x258   :  { %942 = vsyncpa [#allocation3], 1 }
 0x259   :  { %944 = vsyncpa [#allocation3 + $0x1], 1 }

</bundles_post_ra>
